<compile_context>
chip_gen: v6e
topology: v6e:2x2x1
jax: 0.10.0
libtpu: 0.0.40
codegen_flags: <defaults>
</compile_context>

<pallas_src>
import functools
import math

import jax
import jax.numpy as jnp
from jax.experimental import pallas as pl
from jax.experimental.pallas import tpu as pltpu


def _se_kernel(x_ref, w1t_ref, w2t_ref, o_ref, s_ref, *, inv_length, row_chunk):
    """One grid step processes `tb` batch rows.

    x_ref   : (tb, C, L)  input tile
    w1t_ref : (C,  H)     = W1.T  (W1 is the PyTorch (H, C) Linear weight)
    w2t_ref : (H,  C)     = W2.T  (W2 is the PyTorch (C, H) Linear weight)
    o_ref   : (tb, C, L)  output tile
    s_ref   : (tb, C)     f32 VMEM scratch for the per-(row, channel) scale
    """
    # ---- squeeze: AdaptiveAvgPool1d(1) == mean over the length axis --------
    # Streaming reduce over the tile; only the (tb, C) result stays live.
    pooled = jnp.sum(x_ref[...].astype(jnp.float32), axis=-1) * inv_length   # (tb, C)

    # ---- excitation: Linear -> ReLU -> Linear -> Sigmoid --------------------
    # Tiny, heavily padded MXU matmuls; they hide under the x DMA.
    h = jnp.dot(pooled, w1t_ref[...], preferred_element_type=jnp.float32)    # (tb, H)
    h = jnp.maximum(h, 0.0)
    z = jnp.dot(h, w2t_ref[...], preferred_element_type=jnp.float32)         # (tb, C)
    s_ref[...] = 1.0 / (1.0 + jnp.exp(-z))          # sigmoid (exp goes to the EUP)

    # ---- scale: x * y.expand_as(x), chunked over batch rows -----------------
    # Re-read x_ref in small row chunks so only (row_chunk, C, L) elements are
    # live per step: each chunk is load -> multiply -> store, no tile-wide
    # live range and therefore no vreg spill when tb is large.
    n_chunks = x_ref.shape[0] // row_chunk

    @pl.loop(0, n_chunks)
    def _(i):
        r0 = pl.multiple_of(i * row_chunk, row_chunk)
        xs = x_ref[pl.ds(r0, row_chunk), :, :].astype(jnp.float32)           # (rc, C, L)
        sc = s_ref[pl.ds(r0, row_chunk), :]                                  # (rc, C)
        o_ref[pl.ds(r0, row_chunk), :, :] = (xs * sc[:, :, None]).astype(o_ref.dtype)


def _pick_tb(n, c, l, itemsize, *, target_block_bytes=4 << 20, min_steps=8):
    """Batch rows per grid step: ~4 MiB x blocks, but keep >= min_steps grid steps."""
    bytes_per_row = c * l * itemsize
    tb = max(1, min(target_block_bytes // bytes_per_row, max(1, n // min_steps), n))
    while n % tb:          # round down to a divisor of n
        tb -= 1
    return int(tb)


@functools.partial(jax.jit, static_argnames=("tb",))
def se_forward(x, w1, w2, *, tb=None):
    """x: (N, C, L); w1: (H, C); w2: (C, H)  (PyTorch Linear weight layouts)."""
    N, C, L = x.shape
    H = w1.shape[0]
    itemsize = jnp.dtype(x.dtype).itemsize

    if tb is None:
        tb = _pick_tb(N, C, L, itemsize)
    assert N % tb == 0, "tb must divide the batch size"
    # The x/out blocks span the FULL length axis — required for the mean below.
    row_chunk = math.gcd(tb, 8)          # divides tb, <= 8 rows per scale chunk

    # Pre-transpose once so each Linear is a single (tb,C)x(C,H) matmul.
    w1t = jnp.transpose(w1)              # (C, H)
    w2t = jnp.transpose(w2)              # (H, C)

    # VMEM budget: in + out x blocks are double-buffered (~4x block bytes),
    # weights are single-buffered, plus a little slack.  Capped at 48 MiB so
    # the same tiling fits v7x's 64 MiB physical VMEM.
    block_bytes = tb * C * L * itemsize
    weight_bytes = 2 * C * H * w1t.dtype.itemsize
    vmem_needed = 4 * block_bytes + weight_bytes + (2 << 20)
    vmem_limit_bytes = int(min(max(vmem_needed, 16 << 20), 48 << 20))

    kernel = functools.partial(
        _se_kernel, inv_length=1.0 / float(L), row_chunk=row_chunk
    )

    grid_spec = pltpu.PrefetchScalarGridSpec(
        num_scalar_prefetch=0,
        grid=(N // tb,),
        in_specs=[
            # Batched x tile; last dim is the full L -> lane-dense loads/stores.
            pl.BlockSpec((tb, C, L), lambda n: (n, 0, 0)),
            # Resident weights: constant index, single-buffered (never re-DMA'd).
            pl.BlockSpec((C, H), lambda n: (0, 0), pipeline_mode=pl.Buffered(1)),
            pl.BlockSpec((H, C), lambda n: (0, 0), pipeline_mode=pl.Buffered(1)),
        ],
        out_specs=pl.BlockSpec((tb, C, L), lambda n: (n, 0, 0)),
        scratch_shapes=[pltpu.VMEM((tb, C), jnp.float32)],
    )

    return pl.pallas_call(
        kernel,
        out_shape=jax.ShapeDtypeStruct((N, C, L), x.dtype),
        grid_spec=grid_spec,
        compiler_params=pltpu.CompilerParams(
            # Batch blocks are independent -> shard across TCs on v7x,
            # neutral on single-TC v5e/v6e.
            dimension_semantics=("parallel",),
            vmem_limit_bytes=vmem_limit_bytes,
        ),
    )(x, w1t, w2t)


def reference_se(x, w1, w2):
    """Pure-JAX reference matching the PyTorch SELayer forward."""
    y = x.mean(axis=-1)                               # (N, C)
    y = jnp.maximum(y @ w1.T, 0.0)                    # (N, H)
    y = jax.nn.sigmoid(y @ w2.T)                      # (N, C)
    return x * y[:, :, None]


if __name__ == "__main__":
    # Shapes consistent with SELayer(channel=32, reduction=16): hidden H = 2.
    N, C, L = 32, 32, 128
    REDUCTION = 16
    H = C // REDUCTION

    key = jax.random.PRNGKey(0)
    k_x, k_w1, k_w2 = jax.random.split(key, 3)

    x = jax.random.normal(k_x, (N, C, L), dtype=jnp.float32)

    # PyTorch-like Linear init: uniform(-1/sqrt(fan_in), 1/sqrt(fan_in)), no bias.
    bound1 = 1.0 / math.sqrt(C)
    bound2 = 1.0 / math.sqrt(H)
    w1 = jax.random.uniform(k_w1, (H, C), jnp.float32, -bound1, bound1)
    w2 = jax.random.uniform(k_w2, (C, H), jnp.float32, -bound2, bound2)

    out = se_forward(x, w1, w2)          # tb derived from the VMEM budget
    out = jax.block_until_ready(out)

    ref = reference_se(x, w1, w2)
    assert out.shape == (N, C, L), out.shape
    assert jnp.allclose(out, ref, atol=1e-5, rtol=1e-5), (
        float(jnp.max(jnp.abs(out - ref)))
    )
    print("KERNEL_OK")
</pallas_src>

<mosaic_0001>
module attributes {stable_mosaic.version = 11 : i64} {
  func.func @_se_kernel(%arg0: i32, %arg1: memref<4x32x128xf32, #tpu.memory_space<vmem>>, %arg2: memref<32x2xf32, #tpu.memory_space<vmem>>, %arg3: memref<2x32xf32, #tpu.memory_space<vmem>>, %arg4: memref<4x32x128xf32, #tpu.memory_space<vmem>>, %arg5: memref<4x32xf32, #tpu.memory_space<vmem>>) attributes {dimension_semantics = [#tpu.dimension_semantics<parallel>], iteration_bounds = array<i64: 8>, scalar_prefetch = 0 : i64, scratch_operands = 1 : i64, tpu.core_type = #tpu.core_type<tc>, window_params = [{transform_indices = @transform_0, window_bounds = array<i64: 4, 32, 128>}, {pipeline_mode = #tpu.pipeline_mode<synchronous>, transform_indices = @transform_1, window_bounds = array<i64: 32, 2>}, {pipeline_mode = #tpu.pipeline_mode<synchronous>, transform_indices = @transform_2, window_bounds = array<i64: 2, 32>}, {transform_indices = @transform_3, window_bounds = array<i64: 4, 32, 128>}]} {
    %c0 = arith.constant 0 : index
    %c0_0 = arith.constant 0 : index
    %c0_1 = arith.constant 0 : index
    %0 = vector.load %arg1[%c0, %c0_0, %c0_1] : memref<4x32x128xf32, #tpu.memory_space<vmem>>, vector<4x32x128xf32>
    %cst = arith.constant dense<0.000000e+00> : vector<4x32xf32>
    %1 = vector.multi_reduction <add>, %0, %cst [2] : vector<4x32x128xf32> to vector<4x32xf32>
    %cst_2 = arith.constant 7.812500e-03 : f32
    %2 = vector.broadcast %cst_2 : f32 to vector<4x32xf32>
    %3 = arith.mulf %1, %2 : vector<4x32xf32>
    %c0_3 = arith.constant 0 : index
    %c0_4 = arith.constant 0 : index
    %4 = vector.load %arg2[%c0_3, %c0_4] : memref<32x2xf32, #tpu.memory_space<vmem>>, vector<32x2xf32>
    %cst_5 = arith.constant dense<0.000000e+00> : vector<4x2xf32>
    %5 = tpu.matmul %3, %4, %cst_5 {dimension_numbers = #tpu.dot_dimension_numbers<[1], [0], [0], [1], [0, 0, 1, 1], [], []>} : vector<4x32xf32>, vector<32x2xf32>, vector<4x2xf32> -> vector<4x2xf32>
    %cst_6 = arith.constant 0.000000e+00 : f32
    %6 = vector.broadcast %cst_6 : f32 to vector<4x2xf32>
    %7 = arith.maximumf %5, %6 : vector<4x2xf32>
    %c0_7 = arith.constant 0 : index
    %c0_8 = arith.constant 0 : index
    %8 = vector.load %arg3[%c0_7, %c0_8] : memref<2x32xf32, #tpu.memory_space<vmem>>, vector<2x32xf32>
    %cst_9 = arith.constant dense<0.000000e+00> : vector<4x32xf32>
    %9 = tpu.matmul %7, %8, %cst_9 {dimension_numbers = #tpu.dot_dimension_numbers<[1], [0], [0], [1], [0, 0, 1, 1], [], []>} : vector<4x2xf32>, vector<2x32xf32>, vector<4x32xf32> -> vector<4x32xf32>
    %cst_10 = arith.constant 0.000000e+00 : f32
    %10 = vector.broadcast %cst_10 : f32 to vector<4x32xf32>
    %11 = arith.subf %10, %9 : vector<4x32xf32>
    %12 = math.exp %11 : vector<4x32xf32>
    %cst_11 = arith.constant 1.000000e+00 : f32
    %13 = vector.broadcast %cst_11 : f32 to vector<4x32xf32>
    %14 = arith.addf %13, %12 : vector<4x32xf32>
    %cst_12 = arith.constant 1.000000e+00 : f32
    %15 = vector.broadcast %cst_12 : f32 to vector<4x32xf32>
    %16 = arith.divf %15, %14 : vector<4x32xf32>
    %c0_13 = arith.constant 0 : index
    %c0_14 = arith.constant 0 : index
    %17 = vector.load %arg5[%c0_13, %c0_14] : memref<4x32xf32, #tpu.memory_space<vmem>>, vector<4x32xf32>
    tpu.vector_store %arg5[%c0_13, %c0_14], %16 {strides = array<i32>} : memref<4x32xf32, #tpu.memory_space<vmem>>, vector<4x32xf32>,
    %c0_i32 = arith.constant 0 : i32
    %c1_i32 = arith.constant 1 : i32
    %18 = arith.muli %c0_i32, %c1_i32 : i32
    %c0_i32_15 = arith.constant 0 : i32
    %19 = arith.addi %c0_i32_15, %18 : i32
    %c4_i32 = arith.constant 4 : i32
    %20 = arith.muli %19, %c4_i32 : i32
    %21 = tpu.assume_multiple %20, 4 : i32
    %22 = arith.index_cast %21 : i32 to index
    %c0_16 = arith.constant 0 : index
    %c0_17 = arith.constant 0 : index
    %23 = vector.load %arg1[%22, %c0_16, %c0_17] : memref<4x32x128xf32, #tpu.memory_space<vmem>>, vector<4x32x128xf32>
    %24 = arith.index_cast %21 : i32 to index
    %c0_18 = arith.constant 0 : index
    %25 = vector.load %arg5[%24, %c0_18] : memref<4x32xf32, #tpu.memory_space<vmem>>, vector<4x32xf32>
    %26 = vector.shape_cast %25 : vector<4x32xf32> to vector<4x32x1xf32>
    %27 = vector.broadcast %26 : vector<4x32x1xf32> to vector<4x32x128xf32>
    %28 = arith.mulf %23, %27 : vector<4x32x128xf32>
    %29 = arith.index_cast %21 : i32 to index
    %c0_19 = arith.constant 0 : index
    %c0_20 = arith.constant 0 : index
    %30 = vector.load %arg4[%29, %c0_19, %c0_20] : memref<4x32x128xf32, #tpu.memory_space<vmem>>, vector<4x32x128xf32>
    tpu.vector_store %arg4[%29, %c0_19, %c0_20], %28 {strides = array<i32>} : memref<4x32x128xf32, #tpu.memory_space<vmem>>, vector<4x32x128xf32>,
    %c1_i32_21 = arith.constant 1 : i32
    return
  }
  func.func @transform_0(%arg0: i32) -> (i32, i32, i32) {
    %c0_i32 = arith.constant 0 : i32
    %c0_i32_0 = arith.constant 0 : i32
    %c0_i32_1 = arith.constant 0 : i32
    return %arg0, %c0_i32, %c0_i32_0 : i32, i32, i32
  }
  func.func @transform_1(%arg0: i32) -> (i32, i32) {
    %c0_i32 = arith.constant 0 : i32
    %c0_i32_0 = arith.constant 0 : i32
    %c0_i32_1 = arith.constant 0 : i32
    return %c0_i32, %c0_i32_0 : i32, i32
  }
  func.func @transform_2(%arg0: i32) -> (i32, i32) {
    %c0_i32 = arith.constant 0 : i32
    %c0_i32_0 = arith.constant 0 : i32
    %c0_i32_1 = arith.constant 0 : i32
    return %c0_i32, %c0_i32_0 : i32, i32
  }
  func.func @transform_3(%arg0: i32) -> (i32, i32, i32) {
    %c0_i32 = arith.constant 0 : i32
    %c0_i32_0 = arith.constant 0 : i32
    %c0_i32_1 = arith.constant 0 : i32
    return %arg0, %c0_i32, %c0_i32_0 : i32, i32, i32
  }
}

</mosaic_0001>

<bundles_post_ra>
// kernel: se_forward.1
= control target key start
LH: loop header
LB: loop body
LE: loop exit
PB: predicated region body
PF: predicated region fallthrough
CT: control target
= control target key end

     0   :  { %8 = vsyncpa [#allocation4], 0  ;;  %s1262_s0 = inlined_call_operand.hbm [shape: f32[32,32,128], index: 0, kind: input, shape index: {}]   ;;  %s1263_s1 = inlined_call_operand.vmem [shape: f32[32,2], index: 1, kind: input, shape index: {}]   ;;  %s1264_s2 = inlined_call_operand.vmem [shape: f32[2,32], index: 2, kind: input, shape index: {}]   ;;  %s1265_s3 = inlined_call_operand.hbm [shape: f32[32,32,128], index: 3, kind: output, shape index: {}]  }
   0x1   :  { %10 = vsyncpa [#allocation4 + $0x1], 0 }
   0x2   :  { %11 = vsyncpa [#allocation5], 0 }
   0x3   :  { %13 = vsyncpa [#allocation5 + $0x1], 0  ;;  %s967_s12 = smov 0   ;;  %s969_s13 = smov 0  }
   0x4   :  { %s971_s14 = smov 0   ;;  %s973_s15 = smov 0  }
   0x5 LB: > { %s988_s16 = sadd.s32 4294967295, %s937_s15   ;;  %s743_s17 = sadd.s32 4294967294, %s937_s15   ;;  %s937_s15 = sphi %s973_s15, %s1279_s15   ;;  %s933_s14 = sphi %s971_s14, %s1278_s14   ;;  %s929_s13 = sphi %s969_s13, %s1277_s13   ;;  %s925_s12 = sphi %s967_s12, %s1276_s12  }
   0x6   : > { %s992_s18 = sadd.s32 1, %s937_s15   ;;  %s26_s19 = sadd.s32 1, %s933_s14 }
   0x7   : > { %s23_s20 = ssub.s32 %s937_s15, %s992_s18  ;;  %p33_p0 = scmp.ne.s32.totalorder %s933_s14, %s929_s13 }
   0x8   : > { %p24_p1 = scmp.eq.s32.totalorder %s23_s20, 0  ;;  %p34_p2 = scmp.eq.s32.totalorder %s937_s15, 0 }
   0x9   : > { %p39_p3 = scmp.ne.s32.totalorder %s929_s13, %s925_s12  ;;  %p40_p4 = scmp.eq.s32.totalorder %s988_s16, 0 }
   0xa   : > { %s1004_s21 = scalar_select %p24_p1, %s933_s14, %s26_s19  }
   0xb   : > { %p1006_p5 = por %p34_p2, %p33_p0  ;;  %p1010_p6 = por %p40_p4, %p39_p3 }
   0xc   : > { %p105_p7 = scmp.eq.s32.totalorder %s988_s16, 7  ;;  %p111_p8 = scmp.eq.s32.totalorder %s743_s17, 7 }
   0xd   : > { %s1269_s23 = scalar_select %p1010_p6, 1, 0 }
   0xe   : > { %p801_p9 = scmp.lt.s32.totalorder %s937_s15, 8  ;;  %p1016_p10 = por %p105_p7, %p33_p0 }
   0xf   : > { %p1020_p11 = por %p111_p8, %p39_p3  ;;  %s137_s26 = sand.u32 1, %s933_s14  }
  0x10   : > { %s1270_s24 = scalar_select %p1016_p10, 1, 0 }
  0x11   : > { %s1271_s25 = scalar_select %p1020_p11, 1, 0 }
  0x12   : > { %s763_s27 = sshll.u32 %s937_s15, 11  ;;  %s746_s28 = sshll.u32 %s137_s26, 7 }
  0x13   : > { %s1029_s4 = scalar_lea.hbm %s1262_s0, %s763_s27  ;;  %s141_s5 = scalar_lea.vmem [#allocation3], %s746_s28 }
  0x14   : > { %s149_s6 = sshll.u32 %s141_s5, 4  ;;  %p1033_p12 = pnand %p801_p9, %p1006_p5  ;;  %s1037_s6 = int_to_ptr.vmem [resolvable:$true] %s149_s6 }
  0x15   : > { %s1039_s8 = scalar_lea.sflag [#allocation4], %s137_s26  ;;  %s845_s9 = scalar_lea.hbm %s1029_s4, 2048 }
  0x16   : > { %p846_p13 = scmp.ne.s32.totalorder %s1029_s4, %s845_s9  ;;  %p847_p0 = pneg %p1033_p12 }
  0x17   : > { %s850_s17 = scalar_lea.hbm %s1262_s0, 16384  ;;  %p851_p3 = scmp.lt.s32.totalorder %s1029_s4, %s1262_s0 }
  0x18   : > { %p848_p1 = pnand %p847_p0, %p846_p13  ;;  %p852_p4 = scmp.lt.s32.totalorder %s850_s17, %s845_s9 }
  0x1a   : > { %p849_p2 = pneg %p848_p1  ;;  %p853_p5 = por %p852_p4, %p851_p3 }
  0x1c   : > { %p854_p7 = pnand %p853_p5, %p849_p2 }
  0x1e   : > { %857 = shalt.err (!%p854_p7)
}
  0x1f   : > { %s858_s22 = scalar_lea.vmem %s1037_s6, 2048  ;;  %s939_s26 = smov [#allocation3]  }
  0x20   : > { %p859_p8 = scmp.ne.s32.totalorder %s1037_s6, %s858_s22  ;;  %s863_s27 = sshll.u32 %s939_s26, 4  ;;  %s864_s27 = int_to_ptr.vmem [resolvable:$false] %s863_s27 }
  0x21   : > { %s865_s28 = scalar_lea.vmem %s864_s27, 4096  ;;  %p866_p1 = scmp.lt.s32.totalorder %s1037_s6, %s864_s27 }
  0x22   : > { %p861_p9 = pnand %p859_p8, %p847_p0  ;;  %p867_p11 = scmp.lt.s32.totalorder %s865_s28, %s858_s22 }
  0x24   : > { %p862_p13 = pneg %p861_p9  ;;  %p868_p10 = por %p867_p11, %p866_p1 }
  0x26   : > { %p869_p6 = pnand %p868_p10, %p862_p13 }
  0x28   : > { %872 = shalt.err (!%p869_p6)
}
  0x29   : > { %s940_s29 = smov 128   ;;  %s941_s30 = smov 8  }
  0x2a   : > { %796 = dma.hbm_to_vmem [thread:$0]  (!%p1033_p12), %s1029_s4, 2048, %s1037_s6, %s1039_s8, %s940_s29, %s940_s29, %s941_s30  }
  0x2b   : > { %p750_p0 = scmp.ge.s32.totalorder %s937_s15, 1  ;;  %p157_p2 = scmp.lt.s32.totalorder %s937_s15, 9 }
  0x2d   : > { %p158_p3 = pnand %p750_p0, %p157_p2 }
  0x2e   : > { %s1063_s5 = sand.u32 (!%p158_p3), 1, %s929_s13   ;;  %p1273_p6 = scmp.ne.s32.totalorder (!%p158_p3), %s1269_s23, 0 }
  0x2f   : > { %161 = sbr.rel (%p158_p3) target bundleno = 823 (0x337), region = 32  ;;  %s751_s9 = sshll.u32 (!%p158_p3), %s1063_s5, 7 }
  0x30   : > { %s164_s10 = scalar_lea.sflag (!%p158_p3), [#allocation4], %s1063_s5  ;;  %s1069_s11 = scalar_lea.vmem (!%p158_p3), [#allocation3], %s751_s9 }
  0x34   : > { %916 = dma.done.wait (%p1273_p6), %s164_s10, 2048  }
  0x35   : > { %918 = vsyncadd (%p1273_p6), %s164_s10, 4294965248  ;;  %v1076_v0 = vld [vmem:[%s1069_s11 + $0x20] sm:$0xff]  ;;  %v1084_v2 = vld [vmem:[%s1069_s11 + $0x28] sm:$0xff]  ;;  %v942_v16 = vmov 0.0   ;;  %vm943_vm0 = vmmov 0   ;;  %v276_v27 = vlaneseq  ;;  %vm287_vm1 = vcmask 130112  }
  0x36   : > { %v1079_v1 = vld [vmem:[%s1069_s11] sm:$0xff]  ;;  %216 = vadd.xlane.f32.xlu1 %v1076_v0  ;;  %v1087_v3 = vld [vmem:[%s1069_s11 + $0x8] sm:$0xff]  ;;  %v1092_v4 = vld [vmem:[%s1069_s11 + $0x30] sm:$0xff]  ;;  %773 = vmatprep.subr.mxu0 %v942_v16  ;;  %vm294_vm2 = vcmask 195712   ;;  %vm301_vm3 = vcmask 261312   ;;  %vm360_vm4 = vcmask 1041409  }
  0x37   : > { %208 = vadd.xlane.f32.xlu0 %v1079_v1  ;;  %v1095_v5 = vld [vmem:[%s1069_s11 + $0x10] sm:$0xff]  ;;  %v1100_v6 = vld [vmem:[%s1069_s11 + $0x48] sm:$0xff]  ;;  %v1103_v7 = vld [vmem:[%s1069_s11 + $0x40] sm:$0xff]  ;;  %784 = vmatprep.subr.mxu1 %v942_v16  ;;  %v277_v30 = vand.u32 127, %v276_v27  ;;  %v1151_v31 = vshrl.u32 %v276_v27, 7  ;;  %vm362_vm5 = vcmask 1042434  }
  0x38   : > { %v1108_v8 = vld [vmem:[%s1069_s11 + $0x38] sm:$0xff]  ;;  %v1116_v10 = vld [vmem:[%s1069_s11 + $0x60] sm:$0xff]  ;;  %v1119_v11 = vld [vmem:[%s1069_s11 + $0x50] sm:$0xff]  ;;  %781 = vmatprep.mubr.msk.f32.mxu0 %vm943_vm0, %v942_v16  ;;  %786 = vmatprep.mubr.msk.f32.mxu1 %vm943_vm0, %v942_v16  ;;  %vm364_vm6 = vcmask 1043459   ;;  %vm366_vm7 = vcmask 261120   ;;  %vm445_vm8 = vcmask 1041408  }
  0x39   : > { %v1111_v9 = vld [vmem:[%s1069_s11 + $0x18] sm:$0xff]  ;;  %v1127_v13 = vld [vmem:[%s1069_s11 + $0x68] sm:$0xff]  ;;  %v1132_v14 = vld [vmem:[%s1069_s11 + $0x70] sm:$0xff]  ;;  %v282_v32 = vadd.s32 4294967288, %v277_v30  ;;  %v289_v33 = vadd.s32 4294967280, %v277_v30  ;;  %v280_v36 = vsub.s32 %v277_v30, %v1151_v31  ;;  %v296_v37 = vadd.s32 4294967272, %v277_v30 }
  0x3a   : > { %218 = vadd.xlane.f32.xlu1 %v1084_v2  ;;  %v1124_v12 = vld [vmem:[%s1069_s11 + $0x58] sm:$0xff]  ;;  %v258_v18 = vld [vmem:[%s1263_s1 + $0x10] sm:$0xff]  ;;  %v257_v19 = vld [vmem:[%s1263_s1 + $0x8] sm:$0xff]  ;;  %vm441_vm9 = vcmask 15360   ;;  %vm525_vm10 = vcmask 257024   ;;  %s1181_s27 = scalar_lea.vmem [#allocation6], %s751_s9 }
  0x3b   : > { %210 = vadd.xlane.f32.xlu0 %v1087_v3  ;;  %v1135_v15 = vld [vmem:[%s1069_s11 + $0x78] sm:$0xff]  ;;  %v285_v39 = vsub.s32 %v282_v32, %v1151_v31  ;;  %v292_v41 = vsub.s32 %v289_v33, %v1151_v31  ;;  %v299_v50 = vsub.s32 %v296_v37, %v1151_v31  ;;  %s765_s28 = sshll.u32 %s988_s16, 11  ;;  %s670_s29 = sshll.u32 %s1181_s27, 4  ;;  %s1218_s29 = int_to_ptr.vmem [resolvable:$true] %s670_s29 }
  0x3c   : > { %v259_v17 = vld [vmem:[%s1263_s1 + $0x18] sm:$0xff]  ;;  %v256_v20 = vld [vmem:[%s1263_s1] sm:$0xff]  ;;  %s1216_s10 = scalar_lea.hbm %s1265_s3, %s765_s28  ;;  %s656_s11 = scalar_lea.sflag [#allocation5], %s1063_s5 }
  0x3d   : > { %774 = vmatpush3.msra.mxu0 %v259_v17  ;;  %s873_s23 = scalar_lea.vmem %s1218_s29, 2048  ;;  %p1274_p11 = scmp.ne.s32.totalorder %s1270_s24, 0 }
  0x3e   : > { %220 = vadd.xlane.f32.xlu1 %v1092_v4  ;;  %775 = vmatprep.subr.mxu0 %v942_v16  ;;  %p874_p10 = scmp.ne.s32.totalorder %s1218_s29, %s873_s23  ;;  %s944_s16 = smov [#allocation6]  }
  0x3f   : > { %212 = vadd.xlane.f32.xlu0 %v1095_v5  ;;  %776 = vmatpush3.msra.mxu0 %v258_v18  ;;  %s877_s4 = sshll.u32 %s944_s16, 4  ;;  %s878_s4 = int_to_ptr.vmem [resolvable:$false] %s877_s4 }
  0x40   : > { %777 = vmatprep.subr.mxu0 %v942_v16  ;;  %p875_p12 = pnand %p874_p10, %p1274_p11  ;;  %s879_s6 = scalar_lea.vmem %s878_s4, 4096 }
  0x41   : > { %778 = vmatpush3.msra.mxu0 %v257_v19  ;;  %p880_p5 = scmp.lt.s32.totalorder %s1218_s29, %s878_s4  ;;  %p881_p7 = scmp.lt.s32.totalorder %s879_s6, %s873_s23 }
  0x42   : > { %226 = vadd.xlane.f32.xlu1 %v1100_v6  ;;  %779 = vmatprep.subr.mxu0 %v942_v16  ;;  %p876_p4 = pneg %p875_p12 }
  0x43   : > { %224 = vadd.xlane.f32.xlu0 %v1103_v7  ;;  %780 = vmatpush3.msra.mxu0 %v256_v20  ;;  %p882_p8 = por %p881_p7, %p880_p5 }
  0x45   : > { %p883_p9 = pnand %p882_p8, %p876_p4 }
  0x46   : > { %222 = vadd.xlane.f32.xlu1 %v1108_v8 }
  0x47   : > { %214 = vadd.xlane.f32.xlu0 %v1111_v9 }
  0x4a   : > { %232 = vadd.xlane.f32.xlu1 %v1116_v10 }
  0x4b   : > { %228 = vadd.xlane.f32.xlu0 %v1119_v11 }
  0x4e   : > { %230 = vadd.xlane.f32.xlu1 %v1124_v12 }
  0x4f   : > { %234 = vadd.xlane.f32.xlu0 %v1127_v13 }
  0x52   : > { %238 = vadd.xlane.f32.xlu1 %v1135_v15 }
  0x53   : > { %236 = vadd.xlane.f32.xlu0 %v1132_v14 }
  0xbf   : > { %v217_v21 = vpop.xlane.xlu1 %216 }
  0xc0   : > { %v209_v22 = vpop.xlane.xlu0 %208  ;;  %v244_v38 = vmul.f32 0.0078125, %v217_v21 }
  0xc1   : > { %v240_v42 = vmul.f32 0.0078125, %v209_v22 }
  0xc2   : > { %v306_v54 = vrot.slane %v244_v38, %v280_v36 }
  0xc3   : > { %v219_v23 = vpop.xlane.xlu1 %218  ;;  %v281_v56 = vrot.slane %v240_v42, %v280_v36 }
  0xc4   : > { %v211_v24 = vpop.xlane.xlu0 %210  ;;  %v245_v40 = vmul.f32 0.0078125, %v219_v23 }
  0xc5   : > { %v241_v43 = vmul.f32 0.0078125, %v211_v24 }
  0xc6   : > { %v310_v55 = vrot.slane %v245_v40, %v285_v39 }
  0xc7   : > { %v221_v25 = vpop.xlane.xlu1 %220  ;;  %v286_v57 = vrot.slane %v241_v43, %v285_v39 }
  0xc8   : > { %v213_v26 = vpop.xlane.xlu0 %212  ;;  %v246_v44 = vmul.f32 0.0078125, %v221_v25  ;;  %v311_v22 = vsel %vm287_vm1, %v310_v55, %v306_v54 }
  0xc9   : > { %v242_v45 = vmul.f32 0.0078125, %v213_v26  ;;  %v288_v24 = vsel %vm287_vm1, %v286_v57, %v281_v56 }
  0xca   : > { %v315_v58 = vrot.slane %v246_v44, %v292_v41 }
  0xcb   : > { %v227_v28 = vpop.xlane.xlu1 %226  ;;  %v293_v59 = vrot.slane %v242_v45, %v292_v41 }
  0xcc   : > { %v225_v29 = vpop.xlane.xlu0 %224  ;;  %v249_v48 = vmul.f32 0.0078125, %v227_v28  ;;  %v316_v25 = vsel %vm294_vm2, %v315_v58, %v311_v22  ;;  %v548_v58 = vsub.s32 0, %v1151_v31 }
  0xcd   : > { %v248_v49 = vmul.f32 0.0078125, %v225_v29  ;;  %v295_v29 = vsel %vm294_vm2, %v293_v59, %v288_v24 }
  0xce   : > { %v329_v62 = vrot.slane %v249_v48, %v285_v39 }
  0xcf   : > { %v223_v34 = vpop.xlane.xlu1 %222  ;;  %v325_v63 = vrot.slane %v248_v49, %v280_v36 }
  0xd0   : > { %v215_v35 = vpop.xlane.xlu0 %214  ;;  %v247_v51 = vmul.f32 0.0078125, %v223_v34 }
  0xd1   : > { %v243_v52 = vmul.f32 0.0078125, %v215_v35  ;;  %v330_v30 = vsel %vm287_vm1, %v329_v62, %v325_v63  ;;  %v586_v63 = vsub.s32 2, %v1151_v31 }
  0xd2   : > { %v320_v18 = vrot.slane %v247_v51, %v299_v50 }
  0xd3   : > { %v233_v46 = vpop.xlane.xlu1 %232  ;;  %v300_v19 = vrot.slane %v243_v52, %v299_v50 }
  0xd4   : > { %v229_v47 = vpop.xlane.xlu0 %228  ;;  %v252_v20 = vmul.f32 0.0078125, %v233_v46  ;;  %v321_v34 = vsel %vm301_vm3, %v320_v18, %v316_v25 }
  0xd5   : > { %v250_v53 = vmul.f32 0.0078125, %v229_v47  ;;  %v302_v35 = vsel %vm301_vm3, %v300_v19, %v295_v29 }
  0xd6   : > { %v344_v37 = vrot.slane %v252_v20, %v280_v36  ;;  %v361_v45 = vsel %vm360_vm4, %v321_v34, %v302_v35  ;;  %v440_v36 = vld [vmem:[%s1264_s2] sm:$0x3] }
  0xd7   : > { %v231_v60 = vpop.xlane.xlu1 %230  ;;  %v334_v21 = vrot.slane %v250_v53, %v292_v41  ;;  %785 = vmatpush3.msk.msra.mxu1 %vm445_vm8, %v440_v36 }
  0xd8   : > { %v235_v61 = vpop.xlane.xlu0 %234  ;;  %v251_v16 = vmul.f32 0.0078125, %v231_v60 }
  0xd9   : > { %v253_v17 = vmul.f32 0.0078125, %v235_v61  ;;  %v335_v38 = vsel %vm294_vm2, %v334_v21, %v330_v30  ;;  %v567_v61 = vsub.s32 1, %v1151_v31 }
  0xda   : > { %v339_v23 = vrot.slane %v251_v16, %v299_v50 }
  0xdb   : > { %v348_v26 = vrot.slane %v253_v17, %v285_v39  ;;  %v239_v28 = vpop.xlane.xlu1 %238  ;;  %v605_v17 = vsub.s32 3, %v1151_v31 }
  0xdc   : > { %v237_v27 = vpop.xlane.xlu0 %236  ;;  %v255_v33 = vmul.f32 0.0078125, %v239_v28  ;;  %v340_v40 = vsel %vm301_vm3, %v339_v23, %v335_v38 }
  0xdd   : > { %v254_v32 = vmul.f32 0.0078125, %v237_v27  ;;  %v349_v43 = vsel %vm287_vm1, %v348_v26, %v344_v37  ;;  %v363_v47 = vsel %vm362_vm5, %v340_v40, %v361_v45 }
  0xde   : > { %v358_v39 = vrot.slane %v255_v33, %v299_v50 }
  0xdf   : > { %v353_v42 = vrot.slane %v254_v32, %v292_v41 }
  0xe1   : > { %v354_v44 = vsel %vm294_vm2, %v353_v42, %v349_v43 }
  0xe2   : > { %v359_v46 = vsel %vm301_vm3, %v358_v39, %v354_v44 }
  0xe3   : > { %v365_v48 = vsel %vm364_vm6, %v359_v46, %v363_v47 }
  0xe4   : > { %782 = vmatmul.mubr.msk.f32.vlgmr.msra.gmra.mxu0 %vm366_vm7, %v365_v48 }
 0x1a4   : > { %v435_v41 = vpop.f32.mrf.mxu0 }
 0x1a5   : > { %v439_v49 = vmax.f32 %v435_v41, 0.0 }
 0x1a6   : > { %v783_v50 = vpop.f32.mrf.mxu0 }
 0x1a7   : > { %787 = vmatmul.mubr.msk.f32.vlgmr.msra.gmra.mxu1 %vm441_vm9, %v439_v49 }
 0x267   : > { %v515_v51 = vpop.f32.mrf.mxu1 }
 0x268   : > { %v519_v52 = vsub.f32 0.0, %v515_v51 }
 0x269   : > { %v788_v53 = vpop.f32.mrf.mxu1 }
 0x26a   : > { %v520_v54 = vmul.f32 1.442695, %v519_v52 }
 0x26c   : > { %841 = vpow2.f32 %v520_v54 }
 0x279   : > { %v842_v55 = vpop.eup %841 }
 0x27a   : > { %v522_v56 = vadd.f32 1.0, %v842_v55 }
 0x27c   : > { %843 = vrcp.f32 %v522_v56 }
 0x289   : > { %v844_v57 = vpop.eup %843 }
 0x28a   : > { %526 = vst.msk [vmem:[#allocation2] sm:$0xf] %vm525_vm10, %v844_v57 }
 0x291   : > { %v545_v59 = vld [vmem:[#allocation2] sm:$0xf] }
 0x292   : > { %v549_v60 = vrot.slane %v545_v59, %v548_v58  ;;  %v568_v62 = vrot.slane %v545_v59, %v567_v61  ;;  %v587_v16 = vrot.slane %v545_v59, %v586_v63  ;;  %v606_v18 = vrot.slane %v545_v59, %v605_v17 }
 0x294   : > { %555 = vbcast.lane.b32.xlu1 %v549_v60, 264  ;;  %551 = vbcast.lane.b32.xlu0 %v549_v60, 256 }
 0x298   : > { %559 = vbcast.lane.b32.xlu1 %v549_v60, 272  ;;  %570 = vbcast.lane.b32.xlu0 %v568_v62, 256 }
 0x29c   : > { %563 = vbcast.lane.b32.xlu1 %v549_v60, 280  ;;  %578 = vbcast.lane.b32.xlu0 %v568_v62, 272 }
 0x2a0   : > { %574 = vbcast.lane.b32.xlu1 %v568_v62, 264  ;;  %589 = vbcast.lane.b32.xlu0 %v587_v16, 256 }
 0x2a4   : > { %582 = vbcast.lane.b32.xlu1 %v568_v62, 280  ;;  %597 = vbcast.lane.b32.xlu0 %v587_v16, 272 }
 0x2a8   : > { %593 = vbcast.lane.b32.xlu1 %v587_v16, 264  ;;  %608 = vbcast.lane.b32.xlu0 %v606_v18, 256 }
 0x2ac   : > { %601 = vbcast.lane.b32.xlu1 %v587_v16, 280  ;;  %616 = vbcast.lane.b32.xlu0 %v606_v18, 272 }
 0x2b0   : > { %612 = vbcast.lane.b32.xlu1 %v606_v18, 264 }
 0x2b4   : > { %620 = vbcast.lane.b32.xlu1 %v606_v18, 280 }
 0x306   : > { %v556_v19 = vpop.permute.xlu1 %555  ;;  %v552_v20 = vpop.permute.xlu0 %551 }
 0x307   : > { %v623_v21 = vmul.f32 %v556_v19, %v1087_v3  ;;  %v622_v22 = vmul.f32 %v552_v20, %v1079_v1 }
 0x309   : > { %640 = vst [vmem:[%s1181_s27 + $0x8] sm:$0xff] %v623_v21  ;;  %639 = vst [vmem:[%s1181_s27] sm:$0xff] %v622_v22 }
 0x30a   : > { %v560_v31 = vpop.permute.xlu1 %559  ;;  %v571_v23 = vpop.permute.xlu0 %570 }
 0x30b   : > { %v624_v24 = vmul.f32 %v560_v31, %v1095_v5  ;;  %v626_v3 = vmul.f32 %v571_v23, %v1076_v0 }
 0x30d   : > { %641 = vst [vmem:[%s1181_s27 + $0x10] sm:$0xff] %v624_v24  ;;  %643 = vst [vmem:[%s1181_s27 + $0x20] sm:$0xff] %v626_v3 }
 0x30e   : > { %v564_v1 = vpop.permute.xlu1 %563  ;;  %v579_v25 = vpop.permute.xlu0 %578 }
 0x30f   : > { %v625_v26 = vmul.f32 %v564_v1, %v1111_v9  ;;  %v628_v27 = vmul.f32 %v579_v25, %v1092_v4 }
 0x311   : > { %642 = vst [vmem:[%s1181_s27 + $0x18] sm:$0xff] %v625_v26  ;;  %645 = vst [vmem:[%s1181_s27 + $0x30] sm:$0xff] %v628_v27 }
 0x312   : > { %v575_v28 = vpop.permute.xlu1 %574  ;;  %v590_v29 = vpop.permute.xlu0 %589 }
 0x313   : > { %v627_v5 = vmul.f32 %v575_v28, %v1084_v2  ;;  %v630_v0 = vmul.f32 %v590_v29, %v1103_v7 }
 0x315   : > { %644 = vst [vmem:[%s1181_s27 + $0x28] sm:$0xff] %v627_v5  ;;  %647 = vst [vmem:[%s1181_s27 + $0x40] sm:$0xff] %v630_v0 }
 0x316   : > { %v583_v30 = vpop.permute.xlu1 %582  ;;  %v598_v32 = vpop.permute.xlu0 %597 }
 0x317   : > { %v629_v9 = vmul.f32 %v583_v30, %v1108_v8  ;;  %v632_v4 = vmul.f32 %v598_v32, %v1119_v11 }
 0x319   : > { %646 = vst [vmem:[%s1181_s27 + $0x38] sm:$0xff] %v629_v9  ;;  %649 = vst [vmem:[%s1181_s27 + $0x50] sm:$0xff] %v632_v4 }
 0x31a   : > { %v594_v33 = vpop.permute.xlu1 %593  ;;  %v609_v34 = vpop.permute.xlu0 %608 }
 0x31b   : > { %v631_v2 = vmul.f32 %v594_v33, %v1100_v6  ;;  %v634_v7 = vmul.f32 %v609_v34, %v1116_v10 }
 0x31d   : > { %648 = vst [vmem:[%s1181_s27 + $0x48] sm:$0xff] %v631_v2  ;;  %651 = vst [vmem:[%s1181_s27 + $0x60] sm:$0xff] %v634_v7 }
 0x31e   : > { %v602_v35 = vpop.permute.xlu1 %601  ;;  %v617_v37 = vpop.permute.xlu0 %616 }
 0x31f   : > { %v633_v8 = vmul.f32 %v602_v35, %v1124_v12  ;;  %v636_v11 = vmul.f32 %v617_v37, %v1132_v14 }
 0x321   : > { %650 = vst [vmem:[%s1181_s27 + $0x58] sm:$0xff] %v633_v8  ;;  %653 = vst [vmem:[%s1181_s27 + $0x70] sm:$0xff] %v636_v11 }
 0x322   : > { %v613_v38 = vpop.permute.xlu1 %612 }
 0x323   : > { %v635_v40 = vmul.f32 %v613_v38, %v1127_v13 }
 0x325   : > { %652 = vst [vmem:[%s1181_s27 + $0x68] sm:$0xff] %v635_v40 }
 0x326   : > { %v621_v6 = vpop.permute.xlu1 %620 }
 0x327   : > { %v637_v10 = vmul.f32 %v621_v6, %v1135_v15 }
 0x329   : > { %654 = vst [vmem:[%s1181_s27 + $0x78] sm:$0xff] %v637_v10 }
 0x32a   : > { %886 = shalt.err (!%p883_p9)
}
 0x32b   : > { %s887_s7 = scalar_lea.hbm %s1216_s10, 2048  ;;  %s891_s19 = scalar_lea.hbm %s1265_s3, 16384 }
 0x32c   : > { %p888_p13 = scmp.ne.s32.totalorder %s1216_s10, %s887_s7  ;;  %p892_p2 = scmp.lt.s32.totalorder %s1216_s10, %s1265_s3 }
 0x32d   : > { %p893_p3 = scmp.lt.s32.totalorder %s891_s19, %s887_s7 }
 0x32e   : > { %p889_p1 = pnand %p888_p13, %p1274_p11 }
 0x32f   : > { %p894_p6 = por %p893_p3, %p892_p2 }
 0x330   : > { %p890_p0 = pneg %p889_p1 }
 0x332   : > { %p895_p10 = pnand %p894_p6, %p890_p0 }
 0x334   : > { %898 = shalt.err (!%p895_p10)
}
 0x335   : > { %s945_s26 = smov 128   ;;  %s946_s27 = smov 8  }
 0x336   : > { %791 = dma.vmem_to_hbm [thread:$0]  (%p1274_p11), %s1218_s29, 2048, %s1216_s10, %s656_s11, %s945_s26, %s945_s26, %s946_s27  }
 0x337 PF: > { %p802_p12 = scmp.ge.s32.totalorder %s937_s15, 2  ;;  %s685_s28 = sand.u32 1, %s925_s12  }
 0x338   : > { %p1275_p4 = scmp.ne.s32.totalorder %s1271_s25, 0  ;;  %s686_s30 = scalar_lea.sflag [#allocation5], %s685_s28 }
 0x33a   : > { %p798_p5 = pnand %p802_p12, %p1275_p4 }
 0x33c   : > { %p799_p7 = pneg %p798_p5 }
 0x33e   : > { %920 = dma.done.wait (%p799_p7), %s686_s30, 2048  }
 0x33f   : > { %922 = vsyncadd (%p799_p7), %s686_s30, 4294965248  ;;  %p16_p8 = scmp.ge.s32.totalorder %s992_s18, 10   ;;  %s1276_s12 = smov %s929_s13 }
 0x340   : > { %s1277_s13 = smov %s933_s14  ;;  %s1278_s14 = smov %s1004_s21 }
 0x341   : > { %s1279_s15 = smov %s992_s18  ;;  %18 = sbr.rel (!%p16_p8) target bundleno = 5 (0x5), region = 79 }
 0x346   :  { %691 = vsyncpa [#allocation4], 1 }
 0x347   :  { %693 = vsyncpa [#allocation4 + $0x1], 1 }
 0x348   :  { %694 = vsyncpa [#allocation5], 1 }
 0x349   :  { %696 = vsyncpa [#allocation5 + $0x1], 1 }

</bundles_post_ra>
